<compile_context>
chip_gen: v7x
topology: tpu7x:2x2x1
jax: 0.10.0
libtpu: 0.0.40
codegen_flags: <defaults>
</compile_context>

<pallas_src>
import numpy as np
import jax
import jax.numpy as jnp
from jax.experimental import pallas as pl
from jax.experimental.pallas import tpu as pltpu

H_PAD = 128      # lane-dense padded hidden / in / out width
NUM_W = 9        # packed weight matrices: We, (Wlin,W1',W2) x 2 layers, Wl, Wc
NUM_B = 16       # bias slab rows (9 used, rest zero padding)


def _round_up(v, m):
    return (v + m - 1) // m * m


# ---------------------------------------------------------------------------
# Kernel: one grid step == one graph (independent -> "parallel" grid axis).
# ---------------------------------------------------------------------------
def gine_graph_kernel(nn_ref,              # scalar prefetch (SMEM): (G,) node counts
                      x_ref,               # (1, N_pad, 128) bf16 node features
                      src_ref,             # (1, E_pad, 1) int32 local source ids
                      dst_ref,             # (1, 1, E_pad) int32 local dest ids (-1 = pad)
                      et_ref,              # (1, E_pad, 1) int32 edge types (-1 = pad)
                      w_ref,               # (9*128, 128) bf16 packed weights
                      emb_ref,             # (R_pad, 128) bf16 edge-type embedding table
                      b_ref,               # (16, 128) f32 packed biases
                      out_ref):            # (1, 1, 128) f32
    f32, bf16 = jnp.float32, jnp.bfloat16
    g = pl.program_id(0)

    n_pad = x_ref.shape[1]
    e_pad = src_ref.shape[1]
    r_pad = emb_ref.shape[0]

    def W(k):                               # static (128,128) bf16 slice of the weight slab
        return w_ref[k * H_PAD:(k + 1) * H_PAD, :]

    def B(k):                               # static (1,128) f32 bias row
        return b_ref[k:k + 1, :]

    # ---- node encoder: Linear(in, hidden) ----
    x = jnp.dot(x_ref[0], W(0), preferred_element_type=f32) + B(0)          # (N, H) f32

    # ---- edge encoder: one-hot(edge_type) @ embedding (one-hot built in-kernel) ----
    et = et_ref[0]                                                          # (E, 1) i32
    eoh = (et == jax.lax.broadcasted_iota(jnp.int32, (e_pad, r_pad), 1)).astype(bf16)
    ea = jnp.dot(eoh, emb_ref[...], preferred_element_type=f32)             # (E, H) f32

    # ---- gather / scatter masks from int indices (never touch HBM) ----
    src = src_ref[0]                                                        # (E, 1)
    dst = dst_ref[0]                                                        # (1, E)
    gsrc = (src == jax.lax.broadcasted_iota(jnp.int32, (e_pad, n_pad), 1)).astype(bf16)
    sdst = (dst == jax.lax.broadcasted_iota(jnp.int32, (n_pad, e_pad), 0)).astype(bf16)
    # padded edges have dst == -1 -> all-zero scatter column -> no contribution

    def gine_conv(x, base):
        # message: relu(x_src + lin(edge_attr)); BatchNorm already folded into W(base+1)
        eal = jnp.dot(ea.astype(bf16), W(base), preferred_element_type=f32) + B(base)
        x_src = jnp.dot(gsrc, x.astype(bf16), preferred_element_type=f32)   # (E, H)
        msg = jnp.maximum(x_src + eal, 0.0)
        agg = jnp.dot(sdst, msg.astype(bf16), preferred_element_type=f32)   # (N, H)
        o = agg + x                                                         # eps = 0
        h = jnp.dot(o.astype(bf16), W(base + 1), preferred_element_type=f32) + B(base + 1)
        h = jnp.maximum(h, 0.0)
        return jnp.dot(h.astype(bf16), W(base + 2), preferred_element_type=f32) + B(base + 2)

    x = gine_conv(x, 1)
    x = jnp.maximum(x, 0.0)               # relu(dropout(x, p=0)) between GNN layers
    x = gine_conv(x, 4)

    # ---- global_add_pool over the valid nodes of this graph ----
    n_valid = nn_ref[g]
    mask = (jax.lax.broadcasted_iota(jnp.int32, (n_pad, 1), 0) < n_valid).astype(f32)
    pooled = jnp.sum(x * mask, axis=0, keepdims=True)                       # (1, H)

    # ---- Sequential(Linear, ReLU) -> dropout(p=0) -> classifier ----
    h = jnp.maximum(
        jnp.dot(pooled.astype(bf16), W(7), preferred_element_type=f32) + B(7), 0.0)
    out_ref[0] = jnp.dot(h.astype(bf16), W(8), preferred_element_type=f32) + B(8)


# ---------------------------------------------------------------------------
# Parameter prep: BN fold + lane-dense padding + packing into two slabs.
# ---------------------------------------------------------------------------
def init_raw_params(key, in_channels, hidden, out_channels, num_relations):
    f32 = jnp.float32
    keys = iter(jax.random.split(key, 64))

    def lin(kin, kout):
        return (jax.random.normal(next(keys), (kin, kout), f32) * 0.1,
                jax.random.normal(next(keys), (1, kout), f32) * 0.01)

    p = {}
    p["We"], p["be"] = lin(in_channels, hidden)                   # node encoder
    p["emb"] = jax.random.normal(next(keys), (num_relations, hidden), f32) * 0.1
    for l in range(2):
        p[f"Wlin{l}"], p[f"blin{l}"] = lin(hidden, hidden)        # GINEConv.lin
        p[f"W1{l}"], p[f"b1{l}"] = lin(hidden, hidden)            # MLP linear 1
        p[f"W2{l}"], p[f"b2{l}"] = lin(hidden, hidden)            # MLP linear 2
        p[f"gamma{l}"] = 0.5 + jax.random.uniform(next(keys), (1, hidden), f32)
        p[f"beta{l}"] = jax.random.normal(next(keys), (1, hidden), f32) * 0.01
        p[f"rmean{l}"] = jax.random.normal(next(keys), (1, hidden), f32) * 0.01
        p[f"rvar{l}"] = 0.5 + jax.random.uniform(next(keys), (1, hidden), f32)
    p["Wl"], p["bl"] = lin(hidden, hidden)                        # Sequential(Linear, ReLU)
    p["Wc"], p["bc"] = lin(hidden, out_channels)                  # classifier
    return p


def pack_params(p, in_channels, hidden, out_channels, num_relations):
    assert in_channels <= H_PAD and hidden <= H_PAD and out_channels <= H_PAD

    def pad2(a, rows, cols):
        z = jnp.zeros((rows, cols), jnp.float32)
        return z.at[:a.shape[0], :a.shape[1]].set(a)

    Ws, Bs = [], []

    def push(W, b):
        Ws.append(pad2(W, H_PAD, H_PAD))
        Bs.append(pad2(b, 1, H_PAD))

    push(p["We"], p["be"])
    for l in range(2):
        # fold eval-mode BatchNorm1d into MLP linear 1 (exact algebraic fold)
        s = p[f"gamma{l}"] / jnp.sqrt(p[f"rvar{l}"] + 1e-5)
        t = p[f"beta{l}"] - p[f"rmean{l}"] * s
        push(p[f"Wlin{l}"], p[f"blin{l}"])
        push(p[f"W1{l}"] * s, p[f"b1{l}"] * s + t)
        push(p[f"W2{l}"], p[f"b2{l}"])
    push(p["Wl"], p["bl"])
    push(p["Wc"], p["bc"])

    w_pack = jnp.concatenate(Ws, axis=0).astype(jnp.bfloat16)               # (9*128, 128)
    b_pack = jnp.concatenate(
        Bs + [jnp.zeros((NUM_B - len(Bs), H_PAD), jnp.float32)], axis=0)    # (16, 128)
    r_pad = _round_up(max(num_relations, 8), 8)
    emb_pad = pad2(p["emb"], r_pad, H_PAD).astype(jnp.bfloat16)             # (R_pad, 128)
    return w_pack, b_pack, emb_pad


# ---------------------------------------------------------------------------
# Host-side data prep: flat PyG-style batch -> per-graph padded int-index layout.
# (Only O(N + E) int32 data is ever sent to the device.)
# ---------------------------------------------------------------------------
def build_per_graph_batch(x, edge_index, edge_type, batch, num_graphs):
    x = np.asarray(x, np.float32)
    src = np.asarray(edge_index[0])
    dst = np.asarray(edge_index[1])
    et = np.asarray(edge_type)
    b = np.asarray(batch)
    assert x.shape[1] <= H_PAD

    nodes_per_g = [np.nonzero(b == g)[0] for g in range(num_graphs)]
    edges_per_g = [np.nonzero(b[src] == g)[0] for g in range(num_graphs)]
    n_pad = _round_up(max(len(n) for n in nodes_per_g), 8)
    e_pad = _round_up(max(max(len(e) for e in edges_per_g), 1), 8)

    xg = np.zeros((num_graphs, n_pad, H_PAD), np.float32)
    srcg = np.full((num_graphs, e_pad, 1), -1, np.int32)
    dstg = np.full((num_graphs, 1, e_pad), -1, np.int32)
    etg = np.full((num_graphs, e_pad, 1), -1, np.int32)
    n_nodes = np.zeros((num_graphs,), np.int32)

    for g in range(num_graphs):
        nd, ed = nodes_per_g[g], edges_per_g[g]
        local = np.full((x.shape[0],), -1, np.int64)
        local[nd] = np.arange(len(nd))
        xg[g, :len(nd), :x.shape[1]] = x[nd]
        n_nodes[g] = len(nd)
        srcg[g, :len(ed), 0] = local[src[ed]]
        dstg[g, 0, :len(ed)] = local[dst[ed]]
        etg[g, :len(ed), 0] = et[ed]

    return (jnp.asarray(xg, jnp.bfloat16), jnp.asarray(srcg), jnp.asarray(dstg),
            jnp.asarray(etg), jnp.asarray(n_nodes), n_pad, e_pad)


# ---------------------------------------------------------------------------
# Forward wrapper.
# ---------------------------------------------------------------------------
def gine_net_graph_forward(w_pack, b_pack, emb_pad, x, edge_index, edge_type,
                           batch, num_graphs, out_channels):
    x_pad, srcg, dstg, etg, n_nodes, n_pad, e_pad = build_per_graph_batch(
        x, edge_index, edge_type, batch, num_graphs)
    r_pad = emb_pad.shape[0]

    grid_spec = pltpu.PrefetchScalarGridSpec(
        num_scalar_prefetch=1,                 # n_nodes -> SMEM
        grid=(num_graphs,),
        in_specs=[
            pl.BlockSpec((1, n_pad, H_PAD), lambda g, nn: (g, 0, 0)),   # node features
            pl.BlockSpec((1, e_pad, 1),     lambda g, nn: (g, 0, 0)),   # local src ids
            pl.BlockSpec((1, 1, e_pad),     lambda g, nn: (g, 0, 0)),   # local dst ids
            pl.BlockSpec((1, e_pad, 1),     lambda g, nn: (g, 0, 0)),   # edge types
            pl.BlockSpec((NUM_W * H_PAD, H_PAD), lambda g, nn: (0, 0)), # packed weights
            pl.BlockSpec((r_pad, H_PAD),    lambda g, nn: (0, 0)),      # edge embedding
            pl.BlockSpec((NUM_B, H_PAD),    lambda g, nn: (0, 0)),      # packed biases
        ],
        out_specs=pl.BlockSpec((1, 1, H_PAD), lambda g, nn: (g, 0, 0)),
    )

    # advisory cost estimate for XLA scheduling
    H = H_PAD
    flops = 2 * num_graphs * (
        n_pad * H * H + e_pad * r_pad * H
        + 2 * (e_pad * H * H + 2 * e_pad * n_pad * H + 2 * n_pad * H * H)
        + 2 * H * H)
    bytes_accessed = int(sum(a.size * a.dtype.itemsize
                             for a in (x_pad, srcg, dstg, etg, w_pack, emb_pad,
                                       b_pack, n_nodes))
                         + num_graphs * H * 4)

    out = pl.pallas_call(
        gine_graph_kernel,
        out_shape=jax.ShapeDtypeStruct((num_graphs, 1, H_PAD), jnp.float32),
        grid_spec=grid_spec,
        compiler_params=pltpu.CompilerParams(
            dimension_semantics=("parallel",)),            # shard graphs across TCs (v7x)
        cost_estimate=pl.CostEstimate(flops=int(flops), transcendentals=0,
                                      bytes_accessed=bytes_accessed),
    )(n_nodes, x_pad, srcg, dstg, etg, w_pack, emb_pad, b_pack)

    return out[:, 0, :out_channels]


if __name__ == "__main__":
    # Small synthetic graph batch: 2 graphs, 16 nodes total, 24 edges.
    in_channels, hidden, out_channels = 8, 32, 4
    num_relations = 5
    N, E, num_graphs = 16, 24, 2

    key = jax.random.PRNGKey(0)
    k_param, k_x, k_src, k_dst, k_et = jax.random.split(key, 5)

    raw = init_raw_params(k_param, in_channels, hidden, out_channels, num_relations)
    w_pack, b_pack, emb_pad = pack_params(raw, in_channels, hidden, out_channels,
                                          num_relations)

    # Float node features -> the `self.encoder` (Linear) branch of the module.
    x = jax.random.normal(k_x, (N, in_channels), jnp.float32)
    # Edges stay within their own graph (nodes 0..7 -> graph 0, 8..15 -> graph 1).
    src0 = jax.random.randint(k_src, (E // 2,), 0, N // 2)
    dst0 = jax.random.randint(k_dst, (E // 2,), 0, N // 2)
    src1 = jax.random.randint(k_src, (E // 2,), N // 2, N)
    dst1 = jax.random.randint(k_dst, (E // 2,), N // 2, N)
    edge_index = jnp.stack([jnp.concatenate([src0, src1]),
                            jnp.concatenate([dst0, dst1])], axis=0).astype(jnp.int32)
    edge_type = jax.random.randint(k_et, (E,), 0, num_relations).astype(jnp.int32)
    batch = jnp.concatenate([jnp.zeros((N // 2,), jnp.int32),
                             jnp.ones((N // 2,), jnp.int32)])

    # TODO(synk): AtomEncoder branch (int64 node features) not implemented; the
    # float-feature Linear-encoder branch of the forward is used instead.

    out = gine_net_graph_forward(w_pack, b_pack, emb_pad, x, edge_index, edge_type,
                                 batch, num_graphs, out_channels)
    out = jax.block_until_ready(out)
    assert out.shape == (num_graphs, out_channels)
    assert bool(jnp.all(jnp.isfinite(out)))
    print("KERNEL_OK")
</pallas_src>

<mosaic_0001>
module attributes {stable_mosaic.version = 11 : i64} {
  func.func @gine_graph_kernel(%arg0: i32, %arg1: memref<2xi32, #tpu.memory_space<smem>>, %arg2: memref<1x8x128xbf16, #tpu.memory_space<vmem>>, %arg3: memref<1x16x1xi32, #tpu.memory_space<vmem>>, %arg4: memref<1x1x16xi32, #tpu.memory_space<vmem>>, %arg5: memref<1x16x1xi32, #tpu.memory_space<vmem>>, %arg6: memref<1152x128xbf16, #tpu.memory_space<vmem>>, %arg7: memref<8x128xbf16, #tpu.memory_space<vmem>>, %arg8: memref<16x128xf32, #tpu.memory_space<vmem>>, %arg9: memref<1x1x128xf32, #tpu.memory_space<vmem>>) attributes {dimension_semantics = [#tpu.dimension_semantics<parallel>], iteration_bounds = array<i64: 2>, scalar_prefetch = 1 : i64, scratch_operands = 0 : i64, tpu.core_type = #tpu.core_type<tc>, window_params = [{transform_indices = @transform_0, window_bounds = array<i64: 1, 8, 128>}, {transform_indices = @transform_1, window_bounds = array<i64: 1, 16, 1>}, {transform_indices = @transform_2, window_bounds = array<i64: 1, 1, 16>}, {transform_indices = @transform_3, window_bounds = array<i64: 1, 16, 1>}, {pipeline_mode = #tpu.pipeline_mode<synchronous>, transform_indices = @transform_4, window_bounds = array<i64: 1152, 128>}, {pipeline_mode = #tpu.pipeline_mode<synchronous>, transform_indices = @transform_5, window_bounds = array<i64: 8, 128>}, {pipeline_mode = #tpu.pipeline_mode<synchronous>, transform_indices = @transform_6, window_bounds = array<i64: 16, 128>}, {transform_indices = @transform_7, window_bounds = array<i64: 1, 1, 128>}]} {
    %c0 = arith.constant 0 : index
    %c0_0 = arith.constant 0 : index
    %c0_1 = arith.constant 0 : index
    %0 = vector.load %arg2[%c0, %c0_0, %c0_1] : memref<1x8x128xbf16, #tpu.memory_space<vmem>>, vector<1x8x128xbf16>
    %1 = vector.shape_cast %0 : vector<1x8x128xbf16> to vector<8x128xbf16>
    %c0_2 = arith.constant 0 : index
    %c0_3 = arith.constant 0 : index
    %2 = vector.load %arg6[%c0_2, %c0_3] : memref<1152x128xbf16, #tpu.memory_space<vmem>>, vector<128x128xbf16>
    %cst = arith.constant dense<0.000000e+00> : vector<8x128xf32>
    %3 = tpu.matmul %1, %2, %cst {dimension_numbers = #tpu.dot_dimension_numbers<[1], [0], [0], [1], [0, 0, 1, 1], [], []>} : vector<8x128xbf16>, vector<128x128xbf16>, vector<8x128xf32> -> vector<8x128xf32>
    %c0_4 = arith.constant 0 : index
    %c0_5 = arith.constant 0 : index
    %4 = vector.load %arg8[%c0_4, %c0_5] : memref<16x128xf32, #tpu.memory_space<vmem>>, vector<1x128xf32>
    %5 = vector.broadcast %4 : vector<1x128xf32> to vector<8x128xf32>
    %6 = arith.addf %3, %5 : vector<8x128xf32>
    %c0_6 = arith.constant 0 : index
    %c0_7 = arith.constant 0 : index
    %c0_8 = arith.constant 0 : index
    %7 = vector.load %arg5[%c0_6, %c0_7, %c0_8] : memref<1x16x1xi32, #tpu.memory_space<vmem>>, vector<1x16x1xi32>
    %8 = vector.shape_cast %7 : vector<1x16x1xi32> to vector<16x1xi32>
    %9 = tpu.iota {dimensions = array<i32: 1>} : vector<16x8xi32>
    %10 = vector.broadcast %8 : vector<16x1xi32> to vector<16x8xi32>
    %11 = arith.cmpi eq, %10, %9 : vector<16x8xi32>
    %12 = arith.extui %11 : vector<16x8xi1> to vector<16x8xi32>
    %13 = arith.sitofp %12 : vector<16x8xi32> to vector<16x8xf32>
    %14 = arith.truncf %13 : vector<16x8xf32> to vector<16x8xbf16>
    %c0_9 = arith.constant 0 : index
    %c0_10 = arith.constant 0 : index
    %15 = vector.load %arg7[%c0_9, %c0_10] : memref<8x128xbf16, #tpu.memory_space<vmem>>, vector<8x128xbf16>
    %cst_11 = arith.constant dense<0.000000e+00> : vector<16x128xf32>
    %16 = tpu.matmul %14, %15, %cst_11 {dimension_numbers = #tpu.dot_dimension_numbers<[1], [0], [0], [1], [0, 0, 1, 1], [], []>} : vector<16x8xbf16>, vector<8x128xbf16>, vector<16x128xf32> -> vector<16x128xf32>
    %c0_12 = arith.constant 0 : index
    %c0_13 = arith.constant 0 : index
    %c0_14 = arith.constant 0 : index
    %17 = vector.load %arg3[%c0_12, %c0_13, %c0_14] : memref<1x16x1xi32, #tpu.memory_space<vmem>>, vector<1x16x1xi32>
    %18 = vector.shape_cast %17 : vector<1x16x1xi32> to vector<16x1xi32>
    %c0_15 = arith.constant 0 : index
    %c0_16 = arith.constant 0 : index
    %c0_17 = arith.constant 0 : index
    %19 = vector.load %arg4[%c0_15, %c0_16, %c0_17] : memref<1x1x16xi32, #tpu.memory_space<vmem>>, vector<1x1x16xi32>
    %20 = vector.shape_cast %19 : vector<1x1x16xi32> to vector<1x16xi32>
    %21 = tpu.iota {dimensions = array<i32: 1>} : vector<16x8xi32>
    %22 = vector.broadcast %18 : vector<16x1xi32> to vector<16x8xi32>
    %23 = arith.cmpi eq, %22, %21 : vector<16x8xi32>
    %24 = arith.extui %23 : vector<16x8xi1> to vector<16x8xi32>
    %25 = arith.sitofp %24 : vector<16x8xi32> to vector<16x8xf32>
    %26 = arith.truncf %25 : vector<16x8xf32> to vector<16x8xbf16>
    %27 = tpu.iota {dimensions = array<i32: 0>} : vector<8x16xi32>
    %28 = vector.broadcast %20 : vector<1x16xi32> to vector<8x16xi32>
    %29 = arith.cmpi eq, %28, %27 : vector<8x16xi32>
    %30 = arith.extui %29 : vector<8x16xi1> to vector<8x16xi32>
    %31 = arith.sitofp %30 : vector<8x16xi32> to vector<8x16xf32>
    %32 = arith.truncf %31 : vector<8x16xf32> to vector<8x16xbf16>
    %33 = arith.truncf %16 : vector<16x128xf32> to vector<16x128xbf16>
    %c128 = arith.constant 128 : index
    %c0_18 = arith.constant 0 : index
    %34 = vector.load %arg6[%c128, %c0_18] : memref<1152x128xbf16, #tpu.memory_space<vmem>>, vector<128x128xbf16>
    %cst_19 = arith.constant dense<0.000000e+00> : vector<16x128xf32>
    %35 = tpu.matmul %33, %34, %cst_19 {dimension_numbers = #tpu.dot_dimension_numbers<[1], [0], [0], [1], [0, 0, 1, 1], [], []>} : vector<16x128xbf16>, vector<128x128xbf16>, vector<16x128xf32> -> vector<16x128xf32>
    %c1 = arith.constant 1 : index
    %c0_20 = arith.constant 0 : index
    %36 = vector.load %arg8[%c1, %c0_20] : memref<16x128xf32, #tpu.memory_space<vmem>>, vector<1x128xf32>
    %37 = vector.broadcast %36 : vector<1x128xf32> to vector<16x128xf32>
    %38 = arith.addf %35, %37 : vector<16x128xf32>
    %39 = arith.truncf %6 : vector<8x128xf32> to vector<8x128xbf16>
    %cst_21 = arith.constant dense<0.000000e+00> : vector<16x128xf32>
    %40 = tpu.matmul %26, %39, %cst_21 {dimension_numbers = #tpu.dot_dimension_numbers<[1], [0], [0], [1], [0, 0, 1, 1], [], []>} : vector<16x8xbf16>, vector<8x128xbf16>, vector<16x128xf32> -> vector<16x128xf32>
    %41 = arith.addf %40, %38 : vector<16x128xf32>
    %cst_22 = arith.constant 0.000000e+00 : f32
    %42 = vector.broadcast %cst_22 : f32 to vector<16x128xf32>
    %43 = arith.maximumf %41, %42 : vector<16x128xf32>
    %44 = arith.truncf %43 : vector<16x128xf32> to vector<16x128xbf16>
    %cst_23 = arith.constant dense<0.000000e+00> : vector<8x128xf32>
    %45 = tpu.matmul %32, %44, %cst_23 {dimension_numbers = #tpu.dot_dimension_numbers<[1], [0], [0], [1], [0, 0, 1, 1], [], []>} : vector<8x16xbf16>, vector<16x128xbf16>, vector<8x128xf32> -> vector<8x128xf32>
    %46 = arith.addf %45, %6 : vector<8x128xf32>
    %47 = arith.truncf %46 : vector<8x128xf32> to vector<8x128xbf16>
    %c256 = arith.constant 256 : index
    %c0_24 = arith.constant 0 : index
    %48 = vector.load %arg6[%c256, %c0_24] : memref<1152x128xbf16, #tpu.memory_space<vmem>>, vector<128x128xbf16>
    %cst_25 = arith.constant dense<0.000000e+00> : vector<8x128xf32>
    %49 = tpu.matmul %47, %48, %cst_25 {dimension_numbers = #tpu.dot_dimension_numbers<[1], [0], [0], [1], [0, 0, 1, 1], [], []>} : vector<8x128xbf16>, vector<128x128xbf16>, vector<8x128xf32> -> vector<8x128xf32>
    %c2 = arith.constant 2 : index
    %c0_26 = arith.constant 0 : index
    %50 = vector.load %arg8[%c2, %c0_26] : memref<16x128xf32, #tpu.memory_space<vmem>>, vector<1x128xf32>
    %51 = vector.broadcast %50 : vector<1x128xf32> to vector<8x128xf32>
    %52 = arith.addf %49, %51 : vector<8x128xf32>
    %cst_27 = arith.constant 0.000000e+00 : f32
    %53 = vector.broadcast %cst_27 : f32 to vector<8x128xf32>
    %54 = arith.maximumf %52, %53 : vector<8x128xf32>
    %55 = arith.truncf %54 : vector<8x128xf32> to vector<8x128xbf16>
    %c384 = arith.constant 384 : index
    %c0_28 = arith.constant 0 : index
    %56 = vector.load %arg6[%c384, %c0_28] : memref<1152x128xbf16, #tpu.memory_space<vmem>>, vector<128x128xbf16>
    %cst_29 = arith.constant dense<0.000000e+00> : vector<8x128xf32>
    %57 = tpu.matmul %55, %56, %cst_29 {dimension_numbers = #tpu.dot_dimension_numbers<[1], [0], [0], [1], [0, 0, 1, 1], [], []>} : vector<8x128xbf16>, vector<128x128xbf16>, vector<8x128xf32> -> vector<8x128xf32>
    %c3 = arith.constant 3 : index
    %c0_30 = arith.constant 0 : index
    %58 = vector.load %arg8[%c3, %c0_30] : memref<16x128xf32, #tpu.memory_space<vmem>>, vector<1x128xf32>
    %59 = vector.broadcast %58 : vector<1x128xf32> to vector<8x128xf32>
    %60 = arith.addf %57, %59 : vector<8x128xf32>
    %cst_31 = arith.constant 0.000000e+00 : f32
    %61 = vector.broadcast %cst_31 : f32 to vector<8x128xf32>
    %62 = arith.maximumf %60, %61 : vector<8x128xf32>
    %63 = arith.truncf %16 : vector<16x128xf32> to vector<16x128xbf16>
    %c512 = arith.constant 512 : index
    %c0_32 = arith.constant 0 : index
    %64 = vector.load %arg6[%c512, %c0_32] : memref<1152x128xbf16, #tpu.memory_space<vmem>>, vector<128x128xbf16>
    %cst_33 = arith.constant dense<0.000000e+00> : vector<16x128xf32>
    %65 = tpu.matmul %63, %64, %cst_33 {dimension_numbers = #tpu.dot_dimension_numbers<[1], [0], [0], [1], [0, 0, 1, 1], [], []>} : vector<16x128xbf16>, vector<128x128xbf16>, vector<16x128xf32> -> vector<16x128xf32>
    %c4 = arith.constant 4 : index
    %c0_34 = arith.constant 0 : index
    %66 = vector.load %arg8[%c4, %c0_34] : memref<16x128xf32, #tpu.memory_space<vmem>>, vector<1x128xf32>
    %67 = vector.broadcast %66 : vector<1x128xf32> to vector<16x128xf32>
    %68 = arith.addf %65, %67 : vector<16x128xf32>
    %69 = arith.truncf %62 : vector<8x128xf32> to vector<8x128xbf16>
    %cst_35 = arith.constant dense<0.000000e+00> : vector<16x128xf32>
    %70 = tpu.matmul %26, %69, %cst_35 {dimension_numbers = #tpu.dot_dimension_numbers<[1], [0], [0], [1], [0, 0, 1, 1], [], []>} : vector<16x8xbf16>, vector<8x128xbf16>, vector<16x128xf32> -> vector<16x128xf32>
    %71 = arith.addf %70, %68 : vector<16x128xf32>
    %cst_36 = arith.constant 0.000000e+00 : f32
    %72 = vector.broadcast %cst_36 : f32 to vector<16x128xf32>
    %73 = arith.maximumf %71, %72 : vector<16x128xf32>
    %74 = arith.truncf %73 : vector<16x128xf32> to vector<16x128xbf16>
    %cst_37 = arith.constant dense<0.000000e+00> : vector<8x128xf32>
    %75 = tpu.matmul %32, %74, %cst_37 {dimension_numbers = #tpu.dot_dimension_numbers<[1], [0], [0], [1], [0, 0, 1, 1], [], []>} : vector<8x16xbf16>, vector<16x128xbf16>, vector<8x128xf32> -> vector<8x128xf32>
    %76 = arith.addf %75, %62 : vector<8x128xf32>
    %77 = arith.truncf %76 : vector<8x128xf32> to vector<8x128xbf16>
    %c640 = arith.constant 640 : index
    %c0_38 = arith.constant 0 : index
    %78 = vector.load %arg6[%c640, %c0_38] : memref<1152x128xbf16, #tpu.memory_space<vmem>>, vector<128x128xbf16>
    %cst_39 = arith.constant dense<0.000000e+00> : vector<8x128xf32>
    %79 = tpu.matmul %77, %78, %cst_39 {dimension_numbers = #tpu.dot_dimension_numbers<[1], [0], [0], [1], [0, 0, 1, 1], [], []>} : vector<8x128xbf16>, vector<128x128xbf16>, vector<8x128xf32> -> vector<8x128xf32>
    %c5 = arith.constant 5 : index
    %c0_40 = arith.constant 0 : index
    %80 = vector.load %arg8[%c5, %c0_40] : memref<16x128xf32, #tpu.memory_space<vmem>>, vector<1x128xf32>
    %81 = vector.broadcast %80 : vector<1x128xf32> to vector<8x128xf32>
    %82 = arith.addf %79, %81 : vector<8x128xf32>
    %cst_41 = arith.constant 0.000000e+00 : f32
    %83 = vector.broadcast %cst_41 : f32 to vector<8x128xf32>
    %84 = arith.maximumf %82, %83 : vector<8x128xf32>
    %85 = arith.truncf %84 : vector<8x128xf32> to vector<8x128xbf16>
    %c768 = arith.constant 768 : index
    %c0_42 = arith.constant 0 : index
    %86 = vector.load %arg6[%c768, %c0_42] : memref<1152x128xbf16, #tpu.memory_space<vmem>>, vector<128x128xbf16>
    %cst_43 = arith.constant dense<0.000000e+00> : vector<8x128xf32>
    %87 = tpu.matmul %85, %86, %cst_43 {dimension_numbers = #tpu.dot_dimension_numbers<[1], [0], [0], [1], [0, 0, 1, 1], [], []>} : vector<8x128xbf16>, vector<128x128xbf16>, vector<8x128xf32> -> vector<8x128xf32>
    %c6 = arith.constant 6 : index
    %c0_44 = arith.constant 0 : index
    %88 = vector.load %arg8[%c6, %c0_44] : memref<16x128xf32, #tpu.memory_space<vmem>>, vector<1x128xf32>
    %89 = vector.broadcast %88 : vector<1x128xf32> to vector<8x128xf32>
    %90 = arith.addf %87, %89 : vector<8x128xf32>
    %91 = arith.index_cast %arg0 : i32 to index
    %92 = memref.load %arg1[%91] : memref<2xi32, #tpu.memory_space<smem>>
    %93 = tpu.iota {dimensions = array<i32: 0>} : vector<8x1xi32>
    %94 = vector.broadcast %92 : i32 to vector<8x1xi32>
    %95 = arith.cmpi slt, %93, %94 : vector<8x1xi32>
    %96 = arith.extui %95 : vector<8x1xi1> to vector<8x1xi32>
    %97 = arith.sitofp %96 : vector<8x1xi32> to vector<8x1xf32>
    %98 = vector.broadcast %97 : vector<8x1xf32> to vector<8x128xf32>
    %99 = arith.mulf %90, %98 : vector<8x128xf32>
    %cst_45 = arith.constant dense<0.000000e+00> : vector<128xf32>
    %100 = vector.multi_reduction <add>, %99, %cst_45 [0] : vector<8x128xf32> to vector<128xf32>
    %101 = vector.shape_cast %100 : vector<128xf32> to vector<1x128xf32>
    %102 = arith.truncf %101 : vector<1x128xf32> to vector<1x128xbf16>
    %c896 = arith.constant 896 : index
    %c0_46 = arith.constant 0 : index
    %103 = vector.load %arg6[%c896, %c0_46] : memref<1152x128xbf16, #tpu.memory_space<vmem>>, vector<128x128xbf16>
    %cst_47 = arith.constant dense<0.000000e+00> : vector<1x128xf32>
    %104 = tpu.matmul %102, %103, %cst_47 {dimension_numbers = #tpu.dot_dimension_numbers<[1], [0], [0], [1], [0, 0, 1, 1], [], []>} : vector<1x128xbf16>, vector<128x128xbf16>, vector<1x128xf32> -> vector<1x128xf32>
    %c7 = arith.constant 7 : index
    %c0_48 = arith.constant 0 : index
    %105 = vector.load %arg8[%c7, %c0_48] : memref<16x128xf32, #tpu.memory_space<vmem>>, vector<1x128xf32>
    %106 = arith.addf %104, %105 : vector<1x128xf32>
    %cst_49 = arith.constant 0.000000e+00 : f32
    %107 = vector.broadcast %cst_49 : f32 to vector<1x128xf32>
    %108 = arith.maximumf %106, %107 : vector<1x128xf32>
    %109 = arith.truncf %108 : vector<1x128xf32> to vector<1x128xbf16>
    %c1024 = arith.constant 1024 : index
    %c0_50 = arith.constant 0 : index
    %110 = vector.load %arg6[%c1024, %c0_50] : memref<1152x128xbf16, #tpu.memory_space<vmem>>, vector<128x128xbf16>
    %cst_51 = arith.constant dense<0.000000e+00> : vector<1x128xf32>
    %111 = tpu.matmul %109, %110, %cst_51 {dimension_numbers = #tpu.dot_dimension_numbers<[1], [0], [0], [1], [0, 0, 1, 1], [], []>} : vector<1x128xbf16>, vector<128x128xbf16>, vector<1x128xf32> -> vector<1x128xf32>
    %c8 = arith.constant 8 : index
    %c0_52 = arith.constant 0 : index
    %112 = vector.load %arg8[%c8, %c0_52] : memref<16x128xf32, #tpu.memory_space<vmem>>, vector<1x128xf32>
    %113 = arith.addf %111, %112 : vector<1x128xf32>
    %c0_53 = arith.constant 0 : index
    %c0_54 = arith.constant 0 : index
    %c0_55 = arith.constant 0 : index
    %114 = vector.load %arg9[%c0_53, %c0_54, %c0_55] : memref<1x1x128xf32, #tpu.memory_space<vmem>>, vector<1x1x128xf32>
    %115 = vector.shape_cast %114 : vector<1x1x128xf32> to vector<1x128xf32>
    %116 = vector.shape_cast %113 : vector<1x128xf32> to vector<1x1x128xf32>
    tpu.vector_store %arg9[%c0_53, %c0_54, %c0_55], %116 {strides = array<i32>} : memref<1x1x128xf32, #tpu.memory_space<vmem>>, vector<1x1x128xf32>,
    return
  }
  func.func @transform_0(%arg0: i32, %arg1: memref<2xi32, #tpu.memory_space<smem>>) -> (i32, i32, i32) {
    %c0_i32 = arith.constant 0 : i32
    %c0_i32_0 = arith.constant 0 : i32
    %c0_i32_1 = arith.constant 0 : i32
    return %arg0, %c0_i32, %c0_i32_0 : i32, i32, i32
  }
  func.func @transform_1(%arg0: i32, %arg1: memref<2xi32, #tpu.memory_space<smem>>) -> (i32, i32, i32) {
    %c0_i32 = arith.constant 0 : i32
    %c0_i32_0 = arith.constant 0 : i32
    %c0_i32_1 = arith.constant 0 : i32
    return %arg0, %c0_i32, %c0_i32_0 : i32, i32, i32
  }
  func.func @transform_2(%arg0: i32, %arg1: memref<2xi32, #tpu.memory_space<smem>>) -> (i32, i32, i32) {
    %c0_i32 = arith.constant 0 : i32
    %c0_i32_0 = arith.constant 0 : i32
    %c0_i32_1 = arith.constant 0 : i32
    return %arg0, %c0_i32, %c0_i32_0 : i32, i32, i32
  }
  func.func @transform_3(%arg0: i32, %arg1: memref<2xi32, #tpu.memory_space<smem>>) -> (i32, i32, i32) {
    %c0_i32 = arith.constant 0 : i32
    %c0_i32_0 = arith.constant 0 : i32
    %c0_i32_1 = arith.constant 0 : i32
    return %arg0, %c0_i32, %c0_i32_0 : i32, i32, i32
  }
  func.func @transform_4(%arg0: i32, %arg1: memref<2xi32, #tpu.memory_space<smem>>) -> (i32, i32) {
    %c0_i32 = arith.constant 0 : i32
    %c0_i32_0 = arith.constant 0 : i32
    %c0_i32_1 = arith.constant 0 : i32
    return %c0_i32, %c0_i32_0 : i32, i32
  }
  func.func @transform_5(%arg0: i32, %arg1: memref<2xi32, #tpu.memory_space<smem>>) -> (i32, i32) {
    %c0_i32 = arith.constant 0 : i32
    %c0_i32_0 = arith.constant 0 : i32
    %c0_i32_1 = arith.constant 0 : i32
    return %c0_i32, %c0_i32_0 : i32, i32
  }
  func.func @transform_6(%arg0: i32, %arg1: memref<2xi32, #tpu.memory_space<smem>>) -> (i32, i32) {
    %c0_i32 = arith.constant 0 : i32
    %c0_i32_0 = arith.constant 0 : i32
    %c0_i32_1 = arith.constant 0 : i32
    return %c0_i32, %c0_i32_0 : i32, i32
  }
  func.func @transform_7(%arg0: i32, %arg1: memref<2xi32, #tpu.memory_space<smem>>) -> (i32, i32, i32) {
    %c0_i32 = arith.constant 0 : i32
    %c0_i32_0 = arith.constant 0 : i32
    %c0_i32_1 = arith.constant 0 : i32
    return %arg0, %c0_i32, %c0_i32_0 : i32, i32, i32
  }
}

</mosaic_0001>

<bundles_post_ra>
// kernel: tpu_custom_call.1
= control target key start
LH: loop header
LB: loop body
LE: loop exit
PB: predicated region body
PF: predicated region fallthrough
CT: control target
= control target key end

     0   :  { %s2780_s0 = inlined_call_operand.vmem [shape: s32[2], index: 0, kind: input, shape index: {}]   ;;  %s2781_s1 = inlined_call_operand.vmem [shape: bf16[2,8,128], index: 1, kind: input, shape index: {}]   ;;  %s2782_s2 = inlined_call_operand.vmem [shape: s32[2,16,1], index: 2, kind: input, shape index: {}]   ;;  %s2783_s3 = inlined_call_operand.vmem [shape: s32[2,1,16], index: 3, kind: input, shape index: {}]   ;;  %s2784_s4 = inlined_call_operand.vmem [shape: s32[2,16,1], index: 4, kind: input, shape index: {}]   ;;  %s2785_s5 = inlined_call_operand.hbm [shape: bf16[1152,128], index: 5, kind: input, shape index: {}]   ;;  %s2786_s6 = inlined_call_operand.vmem [shape: bf16[8,128], index: 6, kind: input, shape index: {}]   ;;  %s2787_s7 = inlined_call_operand.vmem [shape: f32[16,128], index: 7, kind: input, shape index: {}]   ;;  %s2788_s8 = inlined_call_operand.hbm [shape: f32[2,1,128], index: 8, kind: output, shape index: {}]  }
   0x1   :  { %s13_s29 = sshll.u32 %s2780_s0, 4  ;;  %s14_s29 = int_to_ptr.vmem [resolvable:$true] %s13_s29 }
   0x2   :  { %s2287_s30 = scalar_lea.vmem %s14_s29, 16  ;;  %p2292_p1 = scmp.lt.s32.totalorder %s14_s29, %s14_s29 }
   0x3   :  { %p2288_p0 = scmp.ne.s32.totalorder %s14_s29, %s2287_s30  ;;  %p2293_p2 = scmp.lt.s32.totalorder %s2287_s30, %s2287_s30 }
   0x5   :  { %p2294_p3 = por %p2293_p2, %p2292_p1 }
   0x7   :  { %p2295_p4 = pnand %p2294_p3, %p2288_p0 }
   0x9   :  { %2298 = shalt.err (!%p2295_p4)  }
   0xa   :  { %s2397_s9 = smov [#allocation3]  }
   0xb   :  { %16 = dma.vmem_to_smem %s14_s29, 16, %s2397_s9, [#allocation2] }
   0xc   :  { %2371 = dma.done.wait [#allocation2], 16 }
   0xd   :  { %2372 = vsyncadd [#allocation2], 4294967280 }
   0xe   :  { %18 = sfence }
   0xf   :  { %19 = vsyncpa [#allocation5], 0 }
  0x10   :  { %20 = vsyncpa [#allocation6], 0 }
  0x11   :  { %22 = vsyncpa [#allocation6 + $0x1], 0  ;;  %s2453_s10 = smov 0   ;;  %s2455_s11 = smov 0  }
  0x12   :  { %s2457_s0 = smov 0   ;;  %s2459_s12 = smov 0  }
  0x13 LB: > { %s2474_s13 = sadd.s32 4294967295, %s2395_s12   ;;  %s1739_s14 = sadd.s32 4294967294, %s2395_s12   ;;  %s2395_s12 = sphi %s2459_s12, %s2804_s12   ;;  %s2391_s0 = sphi %s2457_s0, %s2803_s0   ;;  %s2387_s11 = sphi %s2455_s11, %s2802_s11   ;;  %s2383_s10 = sphi %s2453_s10, %s2801_s10  }
  0x14   : > { %s2478_s15 = sadd.s32 1, %s2395_s12   ;;  %s202_s16 = sadd.s32 1, %s2391_s0 }
  0x15   : > { %s199_s17 = ssub.s32 %s2395_s12, %s2478_s15  ;;  %p212_p5 = scmp.ne.s32.totalorder %s2391_s0, %s2387_s11 }
  0x16   : > { %p200_p6 = scmp.eq.s32.totalorder %s199_s17, 0  ;;  %p213_p7 = scmp.eq.s32.totalorder %s2474_s13, 1 }
  0x17   : > { %p218_p8 = scmp.ne.s32.totalorder %s2387_s11, %s2383_s10  ;;  %p219_p9 = scmp.eq.s32.totalorder %s1739_s14, 1 }
  0x18   : > { %s2489_s18 = scalar_select %p200_p6, %s2391_s0, %s202_s16  }
  0x19   : > { %p2491_p10 = por %p213_p7, %p212_p5  ;;  %p2495_p11 = por %p219_p9, %p218_p8 }
  0x1a   : > { %p1740_p12 = scmp.ge.s32.totalorder %s2395_s12, 1  ;;  %p226_p13 = scmp.lt.s32.totalorder %s2395_s12, 3 }
  0x1b   : > { %s2792_s19 = scalar_select %p2491_p10, 1, 0 }
  0x1c   : > { %s2793_s20 = scalar_select %p2495_p11, 1, 0 }
  0x1d   : > { %p2789_p0 = scmp.eq.s32.totalorder %s2474_s13, 0  ;;  %p2502_p1 = pnand %p1740_p12, %p226_p13 }
  0x1e   : > { %s2398_s22 = smov [#allocation4]   ;;  %s2299_s27 = scalar_lea.hbm %s2785_s5, 9216 }
  0x1f   : > { %s2794_s21 = scalar_select %p2502_p1, 1, 0 }
  0x20   : > { %s238_s23 = sshll.u32 %s2398_s22, 4  ;;  %p2163_p2 = pneg %p2502_p1  ;;  %s239_s23 = int_to_ptr.vmem [resolvable:$true] %s238_s23 }
  0x21   : > { %p2300_p4 = scmp.ne.s32.totalorder %s2785_s5, %s2299_s27  ;;  %p2306_p8 = scmp.lt.u32.totalorder %s2299_s27, %s2785_s5 }
  0x22   : > { %p2510_p3 = pnand %p2789_p0, %p2163_p2 }
  0x24   : > { %p2301_p5 = pneg %p2510_p3 }
  0x26   : > { %p2302_p6 = pnand %p2301_p5, %p2300_p4 }
  0x28   : > { %p2303_p7 = pneg %p2302_p6 }
  0x2a   : > { %p2308_p9 = pnand %p2306_p8, %p2303_p7 }
  0x2c   : > { %2311 = shalt.err (!%p2308_p9)
}
  0x2d   : > { %s2312_s14 = scalar_lea.vmem %s239_s23, 9216  ;;  %p2320_p0 = scmp.lt.s32.totalorder %s239_s23, %s239_s23 }
  0x2e   : > { %p2313_p12 = scmp.ne.s32.totalorder %s239_s23, %s2312_s14  ;;  %p2321_p11 = scmp.lt.s32.totalorder %s2312_s14, %s2312_s14 }
  0x30   : > { %p2315_p13 = pnand %p2313_p12, %p2301_p5  ;;  %p2322_p10 = por %p2321_p11, %p2320_p0 }
  0x32   : > { %p2316_p2 = pneg %p2315_p13 }
  0x34   : > { %p2323_p1 = pnand %p2322_p10, %p2316_p2 }
  0x36   : > { %2326 = shalt.err (!%p2323_p1)
}
  0x37   : > { %s2399_s16 = smov 64   ;;  %s2400_s17 = smov 4  }
  0x38   : > { %2166 = dma.hbm_to_vmem [thread:$0]  (!%p2510_p3), %s2785_s5, 9216, %s239_s23, [#allocation5], %s2399_s16, %s2399_s16, %s2400_s17  }
  0x39   : > { %p2796_p4 = scmp.ne.s32.totalorder %s2794_s21, 0 }
  0x3a   : > { %p2797_p6 = scmp.eq.s32.totalorder (!%p2796_p4), %s2474_s13, 0 }
  0x3b   : > { %289 = sbr.rel (%p2796_p4) target bundleno = 2650 (0xa5a), region = 48 }
  0x42   : > { %2374 = dma.done.wait (%p2797_p6), [#allocation5], 9216   ;;  %p2798_p5 = pmov %p2797_p6 }
  0x43   : > { %p332_p10 = scmp.lt.s32.totalorder %s2474_s13, 1  ;;  %v2401_v0 = vmov 0   ;;  %v2402_v1 = vmov 0.0   ;;  %v2215_v3 = vld [vmem:[#allocation4] sm:$0xff]   ;;  %v2216_v5 = vld [vmem:[#allocation4 + $0x8] sm:$0xff]   ;;  %vm482_vm0 = vcmask 1043456   ;;  %v462_v17 = vlaneseq }
  0x44   : > { %2376 = vsyncadd (%p2798_p5), [#allocation5], 4294958080  ;;  %2213 = vset.pattern.permute.xlu0 %v2401_v0  ;;  %1937 = vmatprep.subr.bf16.mxu0 %v2402_v1  ;;  %v2217_v6 = vld [vmem:[#allocation4 + $0x10] sm:$0xff]   ;;  %v477_v7 = vld [vmem:[%s2786_s6] sm:$0xf]  ;;  %vm2403_vm1 = vmmov 0  }
  0x45   : > { %s2539_s24 = scalar_select %p332_p10, %s2474_s13, 1  ;;  %1957 = vmatprep.subr.bf16.mxu1 %v2402_v1  ;;  %2214 = vset.pattern.permute.xlu1 %v2401_v0  ;;  %v484_v8 = vsel %vm482_vm0, %v477_v7, 0  ;;  %v2218_v10 = vld [vmem:[#allocation4 + $0x18] sm:$0xff]   ;;  %v2219_v12 = vld [vmem:[#allocation4 + $0x20] sm:$0xff]   ;;  %v2220_v13 = vld [vmem:[#allocation4 + $0x28] sm:$0xff]   ;;  %v463_v18 = vand.u32 127, %v462_v17 }
  0x46   : > { %1938 = vmatpush3.bf16.msra.mxu0 %v2215_v3  ;;  %1959 = vmatprep.mubr.msk.bf16.mxu1 %vm2403_vm1, %v2402_v1  ;;  %v2221_v14 = vld [vmem:[#allocation4 + $0x30] sm:$0xff]   ;;  %v2222_v15 = vld [vmem:[#allocation4 + $0x38] sm:$0xff]   ;;  %vm478_vm4 = vcmask 64512   ;;  %v2223_v23 = vld [vmem:[#allocation4 + $0x40] sm:$0xff]   ;;  %v2620_v57 = vshrl.u32 %v462_v17, 7  ;;  %vm715_vm8 = vcmask 130048  }
  0x47   : > { %s1844_s21 = sshll.u32 %s2539_s24, 4  ;;  %1939 = vmatprep.subr.bf16.mxu0 %v2402_v1  ;;  %1953 = vmatprep.mubr.msk.bf16.mxu0 %vm2403_vm1, %v2402_v1  ;;  %s1745_s16 = sshll.u32 %s2539_s24, 2  ;;  %v2224_v25 = vld [vmem:[#allocation4 + $0x48] sm:$0xff]   ;;  %v2225_v26 = vld [vmem:[#allocation4 + $0x50] sm:$0xff]   ;;  %v2226_v27 = vld [vmem:[#allocation4 + $0x58] sm:$0xff]  }
  0x48   : > { %s348_s27 = scalar_lea.vmem %s2784_s4, %s1844_s21  ;;  %s340_s14 = scalar_lea.vmem %s2782_s2, %s1844_s21  ;;  %1958 = vmatpush3.bf16.msra.mxu1 %v484_v8  ;;  %v2227_v28 = vld [vmem:[#allocation4 + $0x60] sm:$0xff]   ;;  %v2228_v29 = vld [vmem:[#allocation4 + $0x68] sm:$0xff]   ;;  %v2229_v30 = vld [vmem:[#allocation4 + $0x70] sm:$0xff]  }
  0x49   : > { %v460_v2 = vld [vmem:[%s348_s27] sm:$0xff]  ;;  %v461_v4 = vld [vmem:[%s348_s27 + $0x8] sm:$0xff]  ;;  %1963 = vmatprep.subr.bf16.mxu1 %v2402_v1  ;;  %s335_s25 = scalar_lea.vmem %s2781_s1, %s1745_s16  ;;  %v2230_v31 = vld [vmem:[#allocation4 + $0x78] sm:$0xff]   ;;  %s343_s28 = scalar_lea.vmem %s2783_s3, %s2539_s24 }
  0x4a   : > { %465 = vperm.xlu0 %2213, %v460_v2   ;;  %1940 = vmatpush3.bf16.msra.mxu0 %v2216_v5  ;;  %v527_v9 = vld [vmem:[%s340_s14] sm:$0xff]  ;;  %v528_v11 = vld [vmem:[%s340_s14 + $0x8] sm:$0xff]  ;;  %v2233_v52 = vld [vmem:[#allocation4 + $0x90] sm:$0xff]   ;;  %s1400_s23 = sld [smem:[#allocation3 + %s2474_s13]]  ;;  %s330_s30 = sand.u32 1, %s2387_s11  }
  0x4b   : > { %1941 = vmatprep.subr.bf16.mxu0 %v2402_v1  ;;  %531 = vperm.xlu1 %2214, %v527_v9   ;;  %v350_v16 = vld [vmem:[%s335_s25] sm:$0xf]  ;;  %v2232_v51 = vld [vmem:[#allocation4 + $0x88] sm:$0xff]   ;;  %v2234_v53 = vld [vmem:[#allocation4 + $0x98] sm:$0xff]   ;;  %s1841_s14 = sshll.u32 %s2474_s13, 4  ;;  %s331_s16 = scalar_lea.vmem [#allocation7], %s330_s30 }
  0x4c   : > { %v1750_v36 = vld [vmem:[%s2787_s7] ss:$0 sm:$0xff]  ;;  %v2236_v55 = vld [vmem:[#allocation4 + $0xa8] sm:$0xff]   ;;  %v2237_v56 = vld [vmem:[#allocation4 + $0xb0] sm:$0xff]   ;;  %s1639_s17 = sshll.u32 %s331_s16, 4  ;;  %s2738_s21 = scalar_lea.hbm %s2788_s8, %s1841_s14  ;;  %s2740_s17 = int_to_ptr.vmem [resolvable:$true] %s1639_s17 }
  0x4d   : > { %v2231_v50 = vld [vmem:[#allocation4 + $0x80] sm:$0xff]   ;;  %v2238_v8 = vld [vmem:[#allocation4 + $0xb8] sm:$0xff]   ;;  %s2327_s13 = scalar_lea.vmem %s2740_s17, 16  ;;  %p2799_p0 = scmp.ne.s32.totalorder %s2792_s19, 0 }
  0x4e   : > { %468 = vperm.xlu0 %2213, %v461_v4   ;;  %1942 = vmatpush3.bf16.msra.mxu0 %v2217_v6  ;;  %v2235_v54 = vld [vmem:[#allocation4 + $0xa0] sm:$0xff]   ;;  %p2328_p11 = scmp.ne.s32.totalorder %s2740_s17, %s2327_s13  ;;  %s2404_s26 = smov [#allocation7]  }
  0x4f   : > { %1943 = vmatprep.subr.bf16.mxu0 %v2402_v1  ;;  %534 = vperm.xlu1 %2214, %v528_v11   ;;  %v1766_v58 = vld [vmem:[%s2787_s7 + $0x1] ss:$0 sm:$0xff]  ;;  %v1764_v59 = vld [vmem:[%s343_s28] ss:$0 sm:$0xff]  ;;  %v2249_v11 = vld [vmem:[#allocation4 + $0xd0] sm:$0xff]   ;;  %s2331_s27 = sshll.u32 %s2404_s26, 4  ;;  %s2332_s27 = int_to_ptr.vmem [resolvable:$false] %s2331_s27 }
  0x50   : > { %vm549_vm7 = vcmp.eq.s32.totalorder %v1764_v59, %v2620_v57  ;;  %v2247_v9 = vld [vmem:[#allocation4 + $0xc0] sm:$0xff]   ;;  %p2329_p1 = pnand %p2328_p11, %p2799_p0  ;;  %s2333_s28 = scalar_lea.vmem %s2332_s27, 32 }
  0x51   : > { %v1765_v5 = vsel %vm549_vm7, 1.0, %v2402_v1  ;;  %p2334_p7 = scmp.lt.s32.totalorder %s2740_s17, %s2332_s27  ;;  %p2335_p8 = scmp.lt.s32.totalorder %s2333_s28, %s2327_s13 }
  0x52   : > { %1944 = vmatpush3.bf16.msra.mxu0 %v2218_v10  ;;  %v2627_v7 = vpack.c.bf16 %v1765_v5, %v1765_v5  ;;  %v2248_v10 = vld [vmem:[#allocation4 + $0xc8] sm:$0xff]   ;;  %v2258_v5 = vld [vmem:[#allocation4 + $0x158] sm:$0xff]   ;;  %p2330_p3 = pneg %p2329_p1 }
  0x53   : > { %1945 = vmatprep.subr.bf16.mxu0 %v2402_v1  ;;  %p2336_p9 = por %p2335_p8, %p2334_p7 }
  0x55   : > { %p2337_p12 = pnand %p2336_p9, %p2330_p3 }
  0x56   : > { %1946 = vmatpush3.bf16.msra.mxu0 %v2219_v12  ;;  %v2250_v12 = vld [vmem:[#allocation4 + $0xd8] sm:$0xff]  }
  0x57   : > { %1947 = vmatprep.subr.bf16.mxu0 %v2402_v1 }
  0x5a   : > { %1948 = vmatpush3.bf16.msra.mxu0 %v2220_v13  ;;  %v2251_v13 = vld [vmem:[#allocation4 + $0xe0] sm:$0xff]  }
  0x5b   : > { %1949 = vmatprep.subr.bf16.mxu0 %v2402_v1 }
  0x5e   : > { %1950 = vmatpush3.bf16.msra.mxu0 %v2221_v14  ;;  %v2252_v14 = vld [vmem:[#allocation4 + $0xe8] sm:$0xff]  }
  0x5f   : > { %1951 = vmatprep.subr.bf16.mxu0 %v2402_v1 }
  0x62   : > { %1952 = vmatpush3.bf16.msra.mxu0 %v2222_v15 }
  0x63   : > { %1995 = vmatprep.subr.bf16.mxu0 %v2402_v1 }
  0x65   : > { %1954 = vmatmul.mubr.bf16.vlgmr.msra.gmra.mrb[0].mxu0 %v350_v16 }
  0x66   : > { %2011 = vmatprep.mubr.msk.bf16.mxu0 %vm2403_vm1, %v2402_v1  ;;  %1996 = vmatpush3.bf16.msra.mxu0 %v2231_v50 }
  0x67   : > { %1997 = vmatprep.subr.bf16.mxu0 %v2402_v1 }
  0x6a   : > { %1998 = vmatpush3.bf16.msra.mxu0 %v2232_v51 }
  0x6b   : > { %1999 = vmatprep.subr.bf16.mxu0 %v2402_v1 }
  0x6e   : > { %2000 = vmatpush3.bf16.msra.mxu0 %v2233_v52 }
  0x6f   : > { %2001 = vmatprep.subr.bf16.mxu0 %v2402_v1 }
  0x72   : > { %2002 = vmatpush3.bf16.msra.mxu0 %v2234_v53  ;;  %v1795_v53 = vld [vmem:[%s2787_s7 + $0x4] ss:$0 sm:$0xff] }
  0x73   : > { %2003 = vmatprep.subr.bf16.mxu0 %v2402_v1 }
  0x76   : > { %2004 = vmatpush3.bf16.msra.mxu0 %v2235_v54 }
  0x77   : > { %2005 = vmatprep.subr.bf16.mxu0 %v2402_v1 }
  0x7a   : > { %2006 = vmatpush3.bf16.msra.mxu0 %v2236_v55 }
  0x7b   : > { %2007 = vmatprep.subr.bf16.mxu0 %v2402_v1 }
  0x7e   : > { %2008 = vmatpush3.bf16.msra.mxu0 %v2237_v56 }
  0x7f   : > { %2009 = vmatprep.subr.bf16.mxu0 %v2402_v1 }
  0x82   : > { %2010 = vmatpush3.bf16.msra.mxu0 %v2238_v8  ;;  %v2261_v8 = vld [vmem:[#allocation4 + $0x170] sm:$0xff]  }
  0x83   : > { %2035 = vmatprep.subr.bf16.mxu0 %v2402_v1 }
  0xc9   : > { %v466_v19 = vpop.permute.xlu0 %465 }
  0xca   : > { %vm470_vm2 = vcmp.eq.s32.totalorder %v466_v19, %v463_v18  ;;  %v532_v40 = vpop.permute.xlu1 %531  ;;  %v2239_v19 = vld [vmem:[#allocation4 + $0x100] sm:$0xff]  }
  0xcb   : > { %v1759_v21 = vsel %vm470_vm2, 1.0, %v2402_v1  ;;  %vm536_vm5 = vcmp.eq.s32.totalorder %v532_v40, %v463_v18 }
  0xcc   : > { %v1762_v47 = vsel %vm536_vm5, 1.0, %v2402_v1 }
  0xcd   : > { %v469_v20 = vpop.permute.xlu0 %468 }
  0xce   : > { %vm471_vm3 = vcmp.eq.s32.totalorder %v469_v20, %v463_v18  ;;  %v535_v46 = vpop.permute.xlu1 %534 }
  0xcf   : > { %v1760_v22 = vsel %vm471_vm3, 1.0, %v2402_v1  ;;  %vm537_vm6 = vcmp.eq.s32.totalorder %v535_v46, %v463_v18 }
  0xd0   : > { %v476_v24 = vpack.c.bf16 %v1760_v22, %v1759_v21  ;;  %v1763_v48 = vsel %vm537_vm6, 1.0, %v2402_v1  ;;  %v2240_v22 = vld [vmem:[#allocation4 + $0x108] sm:$0xff]  }
  0xd1   : > { %v2602_v49 = vpack.c.bf16 %v1763_v48, %v1762_v47 }
  0xd2   : > { %1960 = vmatmul.mubr.msk.bf16.vlgmr.msra.gmra.mrb[0].mxu1 %vm478_vm4, %v476_v24  ;;  %v2242_v24 = vld [vmem:[#allocation4 + $0x118] sm:$0xff]  }
  0xd3   : > { %1964 = vmatpush3.bf16.msra.mxu1 %v2223_v23  ;;  %1979 = vmatprep.mubr.msk.bf16.mxu1 %vm2403_vm1, %v2402_v1  ;;  %v2241_v23 = vld [vmem:[#allocation4 + $0x110] sm:$0xff]  }
  0xd4   : > { %1965 = vmatprep.subr.bf16.mxu1 %v2402_v1 }
  0xd7   : > { %1966 = vmatpush3.bf16.msra.mxu1 %v2224_v25  ;;  %v2243_v25 = vld [vmem:[#allocation4 + $0x120] sm:$0xff]  }
  0xd8   : > { %1967 = vmatprep.subr.bf16.mxu1 %v2402_v1 }
  0xdb   : > { %1968 = vmatpush3.bf16.msra.mxu1 %v2225_v26  ;;  %v2244_v26 = vld [vmem:[#allocation4 + $0x128] sm:$0xff]  }
  0xdc   : > { %1969 = vmatprep.subr.bf16.mxu1 %v2402_v1 }
  0xdf   : > { %1970 = vmatpush3.bf16.msra.mxu1 %v2226_v27  ;;  %v2245_v27 = vld [vmem:[#allocation4 + $0x130] sm:$0xff]  }
  0xe0   : > { %1971 = vmatprep.subr.bf16.mxu1 %v2402_v1 }
  0xe3   : > { %1972 = vmatpush3.bf16.msra.mxu1 %v2227_v28  ;;  %v2246_v28 = vld [vmem:[#allocation4 + $0x138] sm:$0xff]  }
  0xe4   : > { %1973 = vmatprep.subr.bf16.mxu1 %v2402_v1 }
  0xe7   : > { %1974 = vmatpush3.bf16.msra.mxu1 %v2228_v29  ;;  %v2253_v29 = vld [vmem:[#allocation4 + $0xf0] sm:$0xff]  }
  0xe8   : > { %1975 = vmatprep.subr.bf16.mxu1 %v2402_v1 }
  0xeb   : > { %1976 = vmatpush3.bf16.msra.mxu1 %v2229_v30  ;;  %v2254_v30 = vld [vmem:[#allocation4 + $0xf8] sm:$0xff]  }
  0xec   : > { %1977 = vmatprep.subr.bf16.mxu1 %v2402_v1 }
  0xef   : > { %1978 = vmatpush3.bf16.msra.mxu1 %v2230_v31  ;;  %v1777_v31 = vld [vmem:[%s2787_s7 + $0x2] ss:$0 sm:$0xff] }
  0xf0   : > { %1983 = vmatprep.subr.bf16.mxu1 %v2402_v1 }
 0x138   : > { %v454_v32 = vpop.f32.mrb[0].mxu0 }
 0x139   : > { %v1955_v33 = vpop.f32.mrb[1].mxu0  ;;  %v2589_v37 = vadd.f32 %v1750_v36, %v454_v32 }
 0x13a   : > { %v457_v34 = vpop.f32.mrb[2].mxu0 }
 0x13b   : > { %v1956_v35 = vpop.f32.mrb[3].mxu0  ;;  %v664_v38 = vpack.c.bf16 %v2589_v37, %v2589_v37 }
 0x13d   : > { %v669_v45 = vsel %vm482_vm0, %v664_v38, 0 }
 0x1a5   : > { %v520_v39 = vpop.f32.mrb[0].mxu1 }
 0x1a6   : > { %v1961_v41 = vpop.f32.mrb[1].mxu1 }
 0x1a7   : > { %v523_v42 = vpop.f32.mrb[2].mxu1 }
 0x1a8   : > { %v2593_v43 = vpack.c.bf16 %v523_v42, %v520_v39  ;;  %v1962_v44 = vpop.f32.mrb[3].mxu1 }
 0x1aa   : > { %1980 = vmatmul.mubr.bf16.vlgmr.msra.gmra.mrb[4].mxu1 %v2593_v43 }
 0x1ab   : > { %1984 = vmatpush3.bf16.msra.mxu1 %v669_v45  ;;  %1985 = vmatprep.mubr.msk.bf16.mxu1 %vm2403_vm1, %v2402_v1 }
 0x1ac   : > { %1989 = vmatprep.subr.bf16.mxu1 %v2402_v1 }
 0x1b6   : > { %1986 = vmatmul.mubr.msk.bf16.vlgmr.msra.gmra.mrb[4].mxu1 %vm478_vm4, %v2602_v49 }
 0x1b7   : > { %1991 = vmatprep.mubr.msk.bf16.mxu1 %vm2403_vm1, %v2402_v1 }
 0x289   : > { %v705_v60 = vpop.f32.mrb[4].mxu1 }
 0x28a   : > { %v2147_v61 = vadd.f32 %v1766_v58, %v705_v60  ;;  %v1987_v62 = vpop.f32.mrb[5].mxu1 }
 0x28b   : > { %v708_v63 = vpop.f32.mrb[6].mxu1 }
 0x28c   : > { %v2148_v0 = vadd.f32 %v1766_v58, %v708_v63  ;;  %v1988_v2 = vpop.f32.mrb[7].mxu1  ;;  %v712_v3 = vmax.f32 %v2147_v61, 0.0 }
 0x28e   : > { %v713_v4 = vmax.f32 %v2148_v0, 0.0 }
 0x290   : > { %v714_v6 = vpack.c.bf16 %v713_v4, %v712_v3  ;;  %v2256_v3 = vld [vmem:[#allocation4 + $0x148] sm:$0xff]   ;;  %v2257_v4 = vld [vmem:[#allocation4 + $0x150] sm:$0xff]  }
 0x292   : > { %1990 = vmatpush3.bf16.msra.mxu1 %v714_v6  ;;  %v2259_v6 = vld [vmem:[#allocation4 + $0x160] sm:$0xff]  }
 0x293   : > { %2015 = vmatprep.subr.bf16.mxu1 %v2402_v1 }
 0x295   : > { %1992 = vmatmul.mubr.msk.bf16.vlgmr.msra.gmra.mrb[8].mxu1 %vm715_vm8, %v2627_v7 }
 0x296   : > { %2031 = vmatprep.mubr.msk.bf16.mxu1 %vm2403_vm1, %v2402_v1  ;;  %2016 = vmatpush3.bf16.msra.mxu1 %v2247_v9  ;;  %v2262_v9 = vld [vmem:[#allocation4 + $0x178] sm:$0xff]  }
 0x297   : > { %2017 = vmatprep.subr.bf16.mxu1 %v2402_v1 }
 0x29a   : > { %2018 = vmatpush3.bf16.msra.mxu1 %v2248_v10  ;;  %v2263_v10 = vld [vmem:[#allocation4 + $0x180] sm:$0xff]  }
 0x29b   : > { %2019 = vmatprep.subr.bf16.mxu1 %v2402_v1 }
 0x29e   : > { %2020 = vmatpush3.bf16.msra.mxu1 %v2249_v11  ;;  %v2264_v11 = vld [vmem:[#allocation4 + $0x188] sm:$0xff]  }
 0x29f   : > { %2021 = vmatprep.subr.bf16.mxu1 %v2402_v1 }
 0x2a2   : > { %2022 = vmatpush3.bf16.msra.mxu1 %v2250_v12  ;;  %v2265_v12 = vld [vmem:[#allocation4 + $0x190] sm:$0xff]  }
 0x2a3   : > { %2023 = vmatprep.subr.bf16.mxu1 %v2402_v1 }
 0x2a6   : > { %2024 = vmatpush3.bf16.msra.mxu1 %v2251_v13  ;;  %v2266_v13 = vld [vmem:[#allocation4 + $0x198] sm:$0xff]  }
 0x2a7   : > { %2025 = vmatprep.subr.bf16.mxu1 %v2402_v1 }
 0x2aa   : > { %2026 = vmatpush3.bf16.msra.mxu1 %v2252_v14  ;;  %v2267_v14 = vld [vmem:[#allocation4 + $0x1a0] sm:$0xff]  }
 0x2ab   : > { %2027 = vmatprep.subr.bf16.mxu1 %v2402_v1 }
 0x2ae   : > { %2028 = vmatpush3.bf16.msra.mxu1 %v2253_v29 }
 0x2af   : > { %2029 = vmatprep.subr.bf16.mxu1 %v2402_v1 }
 0x2b2   : > { %2030 = vmatpush3.bf16.msra.mxu1 %v2254_v30 }
 0x2b3   : > { %2055 = vmatprep.subr.bf16.mxu1 %v2402_v1 }
 0x368   : > { %v753_v15 = vpop.f32.mrb[8].mxu1 }
 0x369   : > { %v754_v16 = vadd.f32 %v753_v15, %v2589_v37  ;;  %v1993_v17 = vpop.f32.mrb[9].mxu1  ;;  %v2268_v15 = vld [vmem:[#allocation4 + $0x1a8] sm:$0xff]  }
 0x36a   : > { %v756_v18 = vpop.f32.mrb[10].mxu1 }
 0x36b   : > { %v759_v20 = vpack.c.bf16 %v754_v16, %v754_v16  ;;  %v1994_v21 = vpop.f32.mrb[11].mxu1 }
 0x36d   : > { %2012 = vmatmul.mubr.bf16.vlgmr.msra.gmra.mrb[4].mxu0 %v759_v20 }
 0x36e   : > { %2036 = vmatpush3.bf16.msra.mxu0 %v2239_v19  ;;  %2051 = vmatprep.mubr.msk.bf16.mxu0 %vm2403_vm1, %v2402_v1 }
 0x36f   : > { %2037 = vmatprep.subr.bf16.mxu0 %v2402_v1 }
 0x372   : > { %2038 = vmatpush3.bf16.msra.mxu0 %v2240_v22  ;;  %v2269_v22 = vld [vmem:[#allocation4 + $0x1b0] sm:$0xff]  }
 0x373   : > { %2039 = vmatprep.subr.bf16.mxu0 %v2402_v1 }
 0x376   : > { %2040 = vmatpush3.bf16.msra.mxu0 %v2241_v23  ;;  %v2270_v23 = vld [vmem:[#allocation4 + $0x1b8] sm:$0xff]  }
 0x377   : > { %2041 = vmatprep.subr.bf16.mxu0 %v2402_v1 }
 0x37a   : > { %2042 = vmatpush3.bf16.msra.mxu0 %v2242_v24  ;;  %v2271_v24 = vld [vmem:[#allocation4 + $0x1c0] sm:$0xff]  }
 0x37b   : > { %2043 = vmatprep.subr.bf16.mxu0 %v2402_v1 }
 0x37e   : > { %2044 = vmatpush3.bf16.msra.mxu0 %v2243_v25  ;;  %v2272_v25 = vld [vmem:[#allocation4 + $0x1c8] sm:$0xff]  }
 0x37f   : > { %2045 = vmatprep.subr.bf16.mxu0 %v2402_v1 }
 0x382   : > { %2046 = vmatpush3.bf16.msra.mxu0 %v2244_v26  ;;  %v2273_v26 = vld [vmem:[#allocation4 + $0x1d0] sm:$0xff]  }
 0x383   : > { %2047 = vmatprep.subr.bf16.mxu0 %v2402_v1 }
 0x386   : > { %2048 = vmatpush3.bf16.msra.mxu0 %v2245_v27  ;;  %v1806_v27 = vld [vmem:[%s2787_s7 + $0x5] ss:$0 sm:$0xff] }
 0x387   : > { %2049 = vmatprep.subr.bf16.mxu0 %v2402_v1 }
 0x38a   : > { %2050 = vmatpush3.bf16.msra.mxu0 %v2246_v28 }
 0x38b   : > { %2087 = vmatprep.subr.bf16.mxu0 %v2402_v1 }
 0x38d   : > { %2052 = vmatmul.mubr.bf16.vlgmr.msra.gmra.mrb[8].mxu0 %v2593_v43  ;;  %v1786_v43 = vld [vmem:[%s2787_s7 + $0x3] ss:$0 sm:$0xff] }
 0x38e   : > { %2103 = vmatprep.mubr.msk.bf16.mxu0 %vm2403_vm1, %v2402_v1  ;;  %2088 = vmatpush3.bf16.msra.mxu0 %v2263_v10 }
 0x38f   : > { %2089 = vmatprep.subr.bf16.mxu0 %v2402_v1 }
 0x392   : > { %2090 = vmatpush3.bf16.msra.mxu0 %v2264_v11 }
 0x393   : > { %2091 = vmatprep.subr.bf16.mxu0 %v2402_v1 }
 0x396   : > { %2092 = vmatpush3.bf16.msra.mxu0 %v2265_v12 }
 0x397   : > { %2093 = vmatprep.subr.bf16.mxu0 %v2402_v1 }
 0x39a   : > { %2094 = vmatpush3.bf16.msra.mxu0 %v2266_v13 }
 0x39b   : > { %2095 = vmatprep.subr.bf16.mxu0 %v2402_v1 }
 0x39e   : > { %2096 = vmatpush3.bf16.msra.mxu0 %v2267_v14 }
 0x39f   : > { %2097 = vmatprep.subr.bf16.mxu0 %v2402_v1 }
 0x3a2   : > { %2098 = vmatpush3.bf16.msra.mxu0 %v2268_v15 }
 0x3a3   : > { %2099 = vmatprep.subr.bf16.mxu0 %v2402_v1 }
 0x3a6   : > { %2100 = vmatpush3.bf16.msra.mxu0 %v2269_v22 }
 0x3a7   : > { %2101 = vmatprep.subr.bf16.mxu0 %v2402_v1 }
 0x3aa   : > { %2102 = vmatpush3.bf16.msra.mxu0 %v2270_v23 }
 0x3ab   : > { %2127 = vmatprep.subr.bf16.mxu0 %v2402_v1 }
 0x440   : > { %v863_v32 = vpop.f32.mrb[4].mxu0 }
 0x441   : > { %v864_v33 = vadd.f32 %v1777_v31, %v863_v32  ;;  %v2013_v34 = vpop.f32.mrb[5].mxu0 }
 0x442   : > { %v866_v35 = vpop.f32.mrb[6].mxu0 }
 0x443   : > { %v869_v36 = vmax.f32 %v864_v33, 0.0  ;;  %v2014_v37 = vpop.f32.mrb[7].mxu0  ;;  %v2274_v35 = vld [vmem:[#allocation4 + $0x1d8] sm:$0xff]  }
 0x444   : > { %v2276_v37 = vld [vmem:[#allocation4 + $0x1e8] sm:$0xff]  }
 0x445   : > { %v870_v38 = vpack.c.bf16 %v869_v36, %v869_v36  ;;  %v2275_v36 = vld [vmem:[#allocation4 + $0x1e0] sm:$0xff]  }
 0x447   : > { %2032 = vmatmul.mubr.bf16.vlgmr.msra.gmra.mrb[12].mxu1 %v870_v38  ;;  %v2277_v38 = vld [vmem:[#allocation4 + $0x1f0] sm:$0xff]  }
 0x448   : > { %2057 = vmatprep.mubr.msk.bf16.mxu1 %vm2403_vm1, %v2402_v1 }
 0x460   : > { %v1084_v39 = vpop.f32.mrb[8].mxu0 }
 0x461   : > { %v2053_v40 = vpop.f32.mrb[9].mxu0  ;;  %v1085_v54 = vadd.f32 %v1795_v53, %v1084_v39  ;;  %v2278_v39 = vld [vmem:[#allocation4 + $0x1f8] sm:$0xff]  }
 0x462   : > { %v1087_v41 = vpop.f32.mrb[10].mxu0  ;;  %v2279_v40 = vld [vmem:[#allocation4 + $0x200] sm:$0xff]  }
 0x463   : > { %v2054_v42 = vpop.f32.mrb[11].mxu0  ;;  %v1088_v56 = vadd.f32 %v1795_v53, %v1087_v41  ;;  %v2280_v41 = vld [vmem:[#allocation4 + $0x208] sm:$0xff]  }
 0x464   : > { %v2281_v42 = vld [vmem:[#allocation4 + $0x210] sm:$0xff]  }
 0x51a   : > { %v974_v44 = vpop.f32.mrb[12].mxu1 }
 0x51b   : > { %v975_v45 = vadd.f32 %v1786_v43, %v974_v44  ;;  %v2033_v46 = vpop.f32.mrb[13].mxu1  ;;  %v2282_v43 = vld [vmem:[#allocation4 + $0x218] sm:$0xff]   ;;  %v2283_v44 = vld [vmem:[#allocation4 + $0x220] sm:$0xff]  }
 0x51c   : > { %v977_v47 = vpop.f32.mrb[14].mxu1  ;;  %v1401_v46 = vstv %s1400_s23  ;;  %s1627_s23 = scalar_lea.sflag [#allocation6], %s330_s30 }
 0x51d   : > { %v2665_v48 = vmax.f32 %v975_v45, 0.0  ;;  %v2034_v50 = vpop.f32.mrb[15].mxu1  ;;  %v2284_v45 = vld [vmem:[#allocation4 + $0x228] sm:$0xff]   ;;  %vm1402_vm9 = vcmp.lt.s32.totalorder %v2620_v57, %v1401_v46  ;;  %v1815_v47 = vld [vmem:[%s2787_s7 + $0x6] ss:$0 sm:$0xff]  ;;  %v2285_v57 = vld [vmem:[#allocation4 + $0x230] sm:$0xff]  }
 0x51e   : > { %v1824_v50 = vsel %vm1402_vm9, 1.0, %v2402_v1 }
 0x51f   : > { %v1091_v51 = vpack.c.bf16 %v2665_v48, %v2665_v48 }
 0x521   : > { %v1093_v52 = vsel %vm482_vm0, %v1091_v51, 0 }
 0x522   : > { %2056 = vmatpush3.bf16.msra.mxu1 %v1093_v52 }
 0x523   : > { %2061 = vmatprep.subr.bf16.mxu1 %v2402_v1 }
 0x525   : > { %2058 = vmatmul.mubr.msk.bf16.vlgmr.msra.gmra.mrb[16].mxu1 %vm478_vm4, %v2602_v49  ;;  %v2255_v49 = vld [vmem:[#allocation4 + $0x140] sm:$0xff]  }
 0x526   : > { %2063 = vmatprep.mubr.msk.bf16.mxu1 %vm2403_vm1, %v2402_v1 }
 0x5f8   : > { %v1129_v55 = vpop.f32.mrb[16].mxu1 }
 0x5f9   : > { %v1130_v58 = vadd.f32 %v1129_v55, %v1085_v54  ;;  %v2059_v59 = vpop.f32.mrb[17].mxu1 }
 0x5fa   : > { %v1132_v60 = vpop.f32.mrb[18].mxu1 }
 0x5fb   : > { %v1133_v61 = vadd.f32 %v1132_v60, %v1088_v56  ;;  %v2060_v62 = vpop.f32.mrb[19].mxu1  ;;  %v1136_v63 = vmax.f32 %v1130_v58, 0.0 }
 0x5fd   : > { %v1137_v0 = vmax.f32 %v1133_v61, 0.0 }
 0x5ff   : > { %v1138_v2 = vpack.c.bf16 %v1137_v0, %v1136_v63  ;;  %v2286_v0 = vld [vmem:[#allocation4 + $0x238] sm:$0xff]  }
 0x601   : > { %2062 = vmatpush3.bf16.msra.mxu1 %v1138_v2  ;;  %v1429_v2 = vld [vmem:[%s2787_s7 + $0x7] sm:$0x1] }
 0x602   : > { %2067 = vmatprep.subr.bf16.mxu1 %v2402_v1 }
 0x604   : > { %2064 = vmatmul.mubr.msk.bf16.vlgmr.msra.gmra.mrb[20].mxu1 %vm715_vm8, %v2627_v7  ;;  %v2260_v7 = vld [vmem:[#allocation4 + $0x168] sm:$0xff]  }
 0x605   : > { %2068 = vmatpush3.bf16.msra.mxu1 %v2255_v49  ;;  %2083 = vmatprep.mubr.msk.bf16.mxu1 %vm2403_vm1, %v2402_v1 }
 0x606   : > { %2069 = vmatprep.subr.bf16.mxu1 %v2402_v1 }
 0x609   : > { %2070 = vmatpush3.bf16.msra.mxu1 %v2256_v3 }
 0x60a   : > { %2071 = vmatprep.subr.bf16.mxu1 %v2402_v1 }
 0x60d   : > { %2072 = vmatpush3.bf16.msra.mxu1 %v2257_v4 }
 0x60e   : > { %2073 = vmatprep.subr.bf16.mxu1 %v2402_v1 }
 0x611   : > { %2074 = vmatpush3.bf16.msra.mxu1 %v2258_v5 }
 0x612   : > { %2075 = vmatprep.subr.bf16.mxu1 %v2402_v1 }
 0x615   : > { %2076 = vmatpush3.bf16.msra.mxu1 %v2259_v6 }
 0x616   : > { %2077 = vmatprep.subr.bf16.mxu1 %v2402_v1 }
 0x619   : > { %2078 = vmatpush3.bf16.msra.mxu1 %v2260_v7 }
 0x61a   : > { %2079 = vmatprep.subr.bf16.mxu1 %v2402_v1 }
 0x61d   : > { %2080 = vmatpush3.bf16.msra.mxu1 %v2261_v8 }
 0x61e   : > { %2081 = vmatprep.subr.bf16.mxu1 %v2402_v1 }
 0x621   : > { %2082 = vmatpush3.bf16.msra.mxu1 %v2262_v9 }
 0x622   : > { %2107 = vmatprep.subr.bf16.mxu1 %v2402_v1 }
 0x6d7   : > { %v1173_v16 = vpop.f32.mrb[20].mxu1 }
 0x6d8   : > { %v1174_v17 = vadd.f32 %v1173_v16, %v2665_v48  ;;  %v2065_v18 = vpop.f32.mrb[21].mxu1 }
 0x6d9   : > { %v1176_v19 = vpop.f32.mrb[22].mxu1 }
 0x6da   : > { %v1179_v20 = vpack.c.bf16 %v1174_v17, %v1174_v17  ;;  %v2066_v21 = vpop.f32.mrb[23].mxu1 }
 0x6dc   : > { %2084 = vmatmul.mubr.bf16.vlgmr.msra.gmra.mrb[24].mxu1 %v1179_v20 }
 0x6dd   : > { %2123 = vmatprep.mubr.msk.bf16.mxu1 %vm2403_vm1, %v2402_v1  ;;  %2108 = vmatpush3.bf16.msra.mxu1 %v2271_v24 }
 0x6de   : > { %2109 = vmatprep.subr.bf16.mxu1 %v2402_v1 }
 0x6e1   : > { %2110 = vmatpush3.bf16.msra.mxu1 %v2272_v25 }
 0x6e2   : > { %2111 = vmatprep.subr.bf16.mxu1 %v2402_v1 }
 0x6e5   : > { %2112 = vmatpush3.bf16.msra.mxu1 %v2273_v26 }
 0x6e6   : > { %2113 = vmatprep.subr.bf16.mxu1 %v2402_v1 }
 0x6e9   : > { %2114 = vmatpush3.bf16.msra.mxu1 %v2274_v35 }
 0x6ea   : > { %2115 = vmatprep.subr.bf16.mxu1 %v2402_v1 }
 0x6ed   : > { %2116 = vmatpush3.bf16.msra.mxu1 %v2275_v36 }
 0x6ee   : > { %2117 = vmatprep.subr.bf16.mxu1 %v2402_v1 }
 0x6f1   : > { %2118 = vmatpush3.bf16.msra.mxu1 %v2276_v37 }
 0x6f2   : > { %2119 = vmatprep.subr.bf16.mxu1 %v2402_v1 }
 0x6f5   : > { %2120 = vmatpush3.bf16.msra.mxu1 %v2277_v38 }
 0x6f6   : > { %2121 = vmatprep.subr.bf16.mxu1 %v2402_v1 }
 0x6f9   : > { %2122 = vmatpush3.bf16.msra.mxu1 %v2278_v39 }
 0x7af   : > { %v1283_v28 = vpop.f32.mrb[24].mxu1 }
 0x7b0   : > { %v1284_v29 = vadd.f32 %v1806_v27, %v1283_v28  ;;  %v2085_v30 = vpop.f32.mrb[25].mxu1 }
 0x7b1   : > { %v1286_v31 = vpop.f32.mrb[26].mxu1 }
 0x7b2   : > { %v1289_v32 = vmax.f32 %v1284_v29, 0.0  ;;  %v2086_v33 = vpop.f32.mrb[27].mxu1 }
 0x7b4   : > { %v1290_v34 = vpack.c.bf16 %v1289_v32, %v1289_v32 }
 0x7b6   : > { %2104 = vmatmul.mubr.bf16.vlgmr.msra.gmra.mrb[12].mxu0 %v1290_v34 }
 0x7b7   : > { %2143 = vmatprep.mubr.msk.bf16.mxu0 %vm2403_vm1, %v2402_v1  ;;  %2128 = vmatpush3.bf16.msra.mxu0 %v2279_v40 }
 0x7b8   : > { %2129 = vmatprep.subr.bf16.mxu0 %v2402_v1 }
 0x7bb   : > { %2130 = vmatpush3.bf16.msra.mxu0 %v2280_v41 }
 0x7bc   : > { %2131 = vmatprep.subr.bf16.mxu0 %v2402_v1 }
 0x7bf   : > { %2132 = vmatpush3.bf16.msra.mxu0 %v2281_v42 }
 0x7c0   : > { %2133 = vmatprep.subr.bf16.mxu0 %v2402_v1 }
 0x7c3   : > { %2134 = vmatpush3.bf16.msra.mxu0 %v2282_v43 }
 0x7c4   : > { %2135 = vmatprep.subr.bf16.mxu0 %v2402_v1 }
 0x7c7   : > { %2136 = vmatpush3.bf16.msra.mxu0 %v2283_v44 }
 0x7c8   : > { %2137 = vmatprep.subr.bf16.mxu0 %v2402_v1 }
 0x7cb   : > { %2138 = vmatpush3.bf16.msra.mxu0 %v2284_v45 }
 0x7cc   : > { %2139 = vmatprep.subr.bf16.mxu0 %v2402_v1 }
 0x7cf   : > { %2140 = vmatpush3.bf16.msra.mxu0 %v2285_v57 }
 0x7d0   : > { %2141 = vmatprep.subr.bf16.mxu0 %v2402_v1  ;;  %v1536_v1 = vld [vmem:[%s2787_s7 + $0x8] sm:$0x1] }
 0x7d3   : > { %2142 = vmatpush3.bf16.msra.mxu0 %v2286_v0 }
 0x889   : > { %v1394_v48 = vpop.f32.mrb[12].mxu0 }
 0x88a   : > { %v1395_v51 = vadd.f32 %v1815_v47, %v1394_v48  ;;  %v2105_v52 = vpop.f32.mrb[13].mxu0 }
 0x88b   : > { %v1397_v53 = vpop.f32.mrb[14].mxu0 }
 0x88c   : > { %v1405_v54 = vmul.f32 %v1824_v50, %v1395_v51  ;;  %v2106_v55 = vpop.f32.mrb[15].mxu0 }
 0x88e   : > { %v1406_v56 = vrot.slane %v1405_v54, 4 }
 0x890   : > { %v1407_v58 = vadd.f32 %v1406_v56, %v1405_v54 }
 0x892   : > { %v1408_v59 = vrot.slane %v1407_v58, 2 }
 0x894   : > { %v1409_v60 = vadd.f32 %v1408_v59, %v1407_v58 }
 0x896   : > { %v1410_v61 = vrot.slane %v1409_v60, 1 }
 0x898   : > { %v1411_v62 = vadd.f32 %v1410_v61, %v1409_v60 }
 0x89a   : > { %v1412_v63 = vpack.c.bf16 %v1411_v62, %v1411_v62 }
 0x89c   : > { %2124 = vmatmul.mubr.bf16.vlgmr.msra.gmra.mrb[28].mxu1 %v1412_v63 }
 0x96f   : > { %v1512_v49 = vpop.f32.mrb[28].mxu1 }
 0x970   : > { %v1513_v3 = vadd.f32 %v1512_v49, %v1429_v2  ;;  %v2125_v4 = vpop.f32.mrb[29].mxu1 }
 0x971   : > { %v1515_v5 = vpop.f32.mrb[30].mxu1 }
 0x972   : > { %v1518_v6 = vmax.f32 %v1513_v3, 0.0  ;;  %v2126_v7 = vpop.f32.mrb[31].mxu1 }
 0x974   : > { %v1519_v8 = vpack.c.bf16 %v1518_v6, %v1518_v6 }
 0x976   : > { %2144 = vmatmul.mubr.bf16.vlgmr.msra.gmra.mrb[16].mxu0 %v1519_v8 }
 0xa49   : > { %v1619_v9 = vpop.f32.mrb[16].mxu0 }
 0xa4a   : > { %v1620_v10 = vadd.f32 %v1619_v9, %v1536_v1  ;;  %v2145_v11 = vpop.f32.mrb[17].mxu0 }
 0xa4b   : > { %v1622_v12 = vpop.f32.mrb[18].mxu0 }
 0xa4c   : > { %1625 = vst [vmem:[%s331_s16] sm:$0x1] %v1620_v10  ;;  %v2146_v13 = vpop.f32.mrb[19].mxu0 }
 0xa4d   : > { %2340 = shalt.err (!%p2337_p12)
}
 0xa4e   : > { %s2341_s29 = scalar_lea.hbm %s2738_s21, 16  ;;  %s2345_s9 = scalar_lea.hbm %s2788_s8, 32 }
 0xa4f   : > { %p2342_p13 = scmp.ne.s32.totalorder %s2738_s21, %s2341_s29  ;;  %p2346_p6 = scmp.lt.u32.totalorder %s2738_s21, %s2788_s8 }
 0xa50   : > { %p2347_p5 = scmp.lt.u32.totalorder %s2345_s9, %s2341_s29  ;;  %p2349_p11 = scmp.lt.u32.totalorder %s2341_s29, %s2738_s21 }
 0xa51   : > { %p2343_p2 = pnand %p2342_p13, %p2799_p0 }
 0xa52   : > { %p2348_p10 = por %p2347_p5, %p2346_p6 }
 0xa53   : > { %p2344_p4 = pneg %p2343_p2 }
 0xa54   : > { %p2350_p1 = por %p2349_p11, %p2348_p10 }
 0xa56   : > { %p2351_p3 = pnand %p2350_p1, %p2344_p4 }
 0xa58   : > { %2354 = shalt.err (!%p2351_p3)
}
 0xa59   : > { %2161 = dma.vmem_to_hbm [thread:$0]  (%p2799_p0), %s2740_s17, 16, %s2738_s21, %s1627_s23  }
 0xa5a PF: > { %p2173_p7 = scmp.ge.s32.totalorder %s2395_s12, 2  ;;  %s1651_s22 = sand.u32 1, %s2383_s10  }
 0xa5b   : > { %p2800_p8 = scmp.ne.s32.totalorder %s2793_s20, 0  ;;  %s1652_s25 = scalar_lea.sflag [#allocation6], %s1651_s22 }
 0xa5d   : > { %p2168_p9 = pnand %p2173_p7, %p2800_p8 }
 0xa5f   : > { %2378 = dma.done.wait (!%p2168_p9), %s1652_s25, 16  }
 0xa60   : > { %2380 = vsyncadd (!%p2168_p9), %s1652_s25, 4294967280  ;;  %p25_p12 = scmp.ge.s32.totalorder %s2478_s15, 4   ;;  %s2801_s10 = smov %s2387_s11 }
 0xa61   : > { %s2802_s11 = smov %s2391_s0  ;;  %s2803_s0 = smov %s2489_s18 }
 0xa62   : > { %s2804_s12 = smov %s2478_s15  ;;  %27 = sbr.rel (!%p25_p12) target bundleno = 19 (0x13), region = 97 }
 0xa69   :  { %1656 = vsyncpa [#allocation5], 1 }
 0xa6a   :  { %1658 = vsyncpa [#allocation5 + $0x1], 1 }
 0xa6b   :  { %1659 = vsyncpa [#allocation6], 1 }
 0xa6c   :  { %1661 = vsyncpa [#allocation6 + $0x1], 1 }

</bundles_post_ra>
